<compile_context>
chip_gen: v6e
topology: v6e:2x2x1
jax: 0.10.0
libtpu: 0.0.40
codegen_flags: <defaults>
</compile_context>

<pallas_src>
import numpy as np
import jax
import jax.numpy as jnp
from jax.experimental import pallas as pl
from jax.experimental.pallas import tpu as pltpu

_VMEM = pl.BlockSpec(memory_space=pltpu.MemorySpace.VMEM)
_SMEM = pl.BlockSpec(memory_space=pltpu.MemorySpace.SMEM)

LANE = 128  # slab width / lane-dense padded output width

CFG = dict(
    batch_size=2,
    num_mlp_layers=2,
    num_mlp_pooling_layers=2,
    input_dim=4,
    hidden_dim=32,
    output_dim=3,
    final_dropout=0.5,
    poolings=[4, 2],
    update_layers=2,
    mpl_layers_pred=2,
    mlp_pred_factor=2.0,
    print_mode=0,
)


# ----------------------------------------------------------------------------
# Parameter construction (deterministic, synthetic)
# ----------------------------------------------------------------------------

def init_params(key, cfg):
    kit = iter(jax.random.split(key, 256))

    def nxt():
        return next(kit)

    def linear_init(din, dout):
        w = jax.random.normal(nxt(), (din, dout), jnp.float32) / np.sqrt(din)
        b = 0.01 * jax.random.normal(nxt(), (1, dout), jnp.float32)
        return (w, b)

    def bn_init(dim):
        # Fold (gamma, beta, running_mean, running_var) -> (scale, shift) for eval-mode BN.
        gamma = 1.0 + 0.1 * jax.random.normal(nxt(), (dim,), jnp.float32)
        beta = 0.1 * jax.random.normal(nxt(), (dim,), jnp.float32)
        rmean = 0.1 * jax.random.normal(nxt(), (dim,), jnp.float32)
        rvar = 0.5 + jax.random.uniform(nxt(), (dim,), jnp.float32)
        scale = gamma / jnp.sqrt(rvar + 1e-5)
        shift = beta - rmean * scale
        return (scale.reshape(1, dim), shift.reshape(1, dim))

    def mlp_init(num_layers, din, dhid, dout):
        if num_layers == 1:
            return {"linears": [linear_init(din, dout)], "bns": []}
        linears = [linear_init(din, dhid)]
        for _ in range(num_layers - 2):
            linears.append(linear_init(dhid, dhid))
        linears.append(linear_init(dhid, dout))
        bns = [bn_init(dhid) for _ in range(num_layers - 1)]
        return {"linears": linears, "bns": bns}

    hid = cfg["hidden_dim"]
    num_update = cfg["update_layers"] * len(cfg["poolings"])

    params = {}
    params["eps"] = jnp.zeros((num_update,), jnp.float32)
    params["edge_features"] = 0.01 * jax.random.normal(nxt(), (6,), jnp.float32)

    mlps = [mlp_init(cfg["num_mlp_layers"], cfg["input_dim"], hid, hid)]
    for _ in cfg["poolings"]:
        for _ in range(cfg["update_layers"]):
            mlps.append(mlp_init(cfg["num_mlp_layers"], hid, hid, hid))
    params["mlps"] = mlps

    params["pools"] = [
        mlp_init(cfg["num_mlp_pooling_layers"], hid, hid, p * cfg["batch_size"])
        for p in cfg["poolings"]
    ]
    params["bn"] = [bn_init(hid) for _ in range(num_update)]
    params["bn_pool"] = [bn_init(hid) for _ in range(len(cfg["poolings"]))]

    pred_hid = int(np.round(hid * cfg["mlp_pred_factor"]))
    params["prediction"] = mlp_init(cfg["mpl_layers_pred"], hid, pred_hid, cfg["output_dim"])
    return params


# ----------------------------------------------------------------------------
# Host-side helpers (static shapes / static graph sizes -> plain numpy)
# ----------------------------------------------------------------------------

def construct_mask(max_nodes, batch_num_nodes, new_nodes):
    """Faithful re-implementation of GraphCNN.construct_mask. Returns [max_nodes, B*new_nodes]."""
    bnn = np.repeat(np.asarray(batch_num_nodes), new_nodes)
    bs = len(bnn)
    out = np.zeros((bs, max_nodes), dtype=np.float32)
    shift = 0
    window = 0
    for i, num in enumerate(bnn):
        out[i, shift:shift + int(num)] = 1.0
        window += 1
        if window == new_nodes:
            shift += int(num)
            window = 0
    return out.T


def _f32(a):
    return a if a.dtype == jnp.float32 else a.astype(jnp.float32)


class _SlabPacker:
    """Packs many small [r, c<=LANE] f32 arrays into one [R, LANE] f32 slab.

    Row starts are 8-aligned so in-kernel static slices stay sublane-tile aligned.
    Returns (row_start, nrows, ncols) handles (plain Python ints, captured by the
    kernel closure -> zero runtime indexing cost)."""

    def __init__(self, width=LANE):
        self.width = width
        self._chunks = []
        self._cursor = 0

    def add(self, arr):
        arr = np.asarray(arr, np.float32)
        if arr.ndim == 1:
            arr = arr.reshape(1, -1)
        r, c = arr.shape
        assert c <= self.width, (arr.shape, self.width)
        padded = np.zeros((r + (-r) % 8, self.width), np.float32)
        padded[:r, :c] = arr
        handle = (self._cursor, r, c)
        self._chunks.append(padded)
        self._cursor += padded.shape[0]
        return handle

    def finalize(self):
        return jnp.asarray(np.concatenate(self._chunks, axis=0))


def _fold_bn_into_linear(w, b, sc, sh):
    # y = (x @ w + b) * sc + sh  ==  x @ (w * sc) + (b * sc + sh)
    return w * sc, b * sc + sh


def _build_plan(params, cfg, masks, packer):
    """Fold eval-mode BN into Linears, pack every used parameter / mask into the slab,
    and return a nested dict of static (row, nrows, ncols) handles mirroring the forward."""
    poolings = cfg["poolings"]
    update_layers = cfg["update_layers"]

    def pack_mlp(mlp, fold_final=None, pad_out_to=None):
        linears = [(np.asarray(w), np.asarray(b)) for (w, b) in mlp["linears"]]
        bns = [(np.asarray(sc), np.asarray(sh)) for (sc, sh) in mlp["bns"]]
        handles = []
        n = len(linears)
        for i in range(n):
            w, b = linears[i]
            if i < n - 1:                               # internal Linear -> BN -> ReLU
                sc, sh = bns[i]
                w, b = _fold_bn_into_linear(w, b, sc, sh)
            elif fold_final is not None:                # external BN right after the MLP
                sc, sh = fold_final
                w, b = _fold_bn_into_linear(w, b, np.asarray(sc), np.asarray(sh))
            if i == n - 1 and pad_out_to is not None:   # lane-dense final output
                wp = np.zeros((w.shape[0], pad_out_to), np.float32)
                wp[:, :w.shape[1]] = w
                bp = np.zeros((1, pad_out_to), np.float32)
                bp[:, :b.shape[1]] = b
                w, b = wp, bp
            handles.append((packer.add(w), packer.add(b)))
        return handles

    plan = {"blocks": []}
    for i_block, next_pooling in enumerate(poolings):
        update_layers_local = min(update_layers, next_pooling) - 1
        blk = {"updates": [], "pool": None, "bn_pool": None, "mask": None}
        for u_layer in range(update_layers_local):
            layer = i_block * update_layers + u_layer
            blk["updates"].append({
                "eps_idx": layer,
                "mlp": pack_mlp(params["mlps"][layer], fold_final=params["bn"][layer]),
            })
        blk["pool"] = pack_mlp(params["pools"][i_block])
        sc, sh = params["bn_pool"][i_block]
        blk["bn_pool"] = (packer.add(np.asarray(sc)), packer.add(np.asarray(sh)))
        blk["mask"] = packer.add(masks[i_block])
        plan["blocks"].append(blk)

    plan["prediction"] = pack_mlp(params["prediction"], pad_out_to=LANE)
    return plan


# ----------------------------------------------------------------------------
# The single fused forward kernel
# ----------------------------------------------------------------------------

def _build_fused_kernel(plan, num_eps):
    def _get(slab_ref, handle):
        r0, nr, nc = handle
        return slab_ref[r0:r0 + nr, 0:nc]               # static slice of the packed slab

    def _dot(a, b):
        # f32 operands straight into the MXU (latency-bound at these shapes -> no bf16).
        return jnp.dot(a, b, preferred_element_type=jnp.float32)

    def _dot_t(a, b):
        # a.T @ b without materializing a transpose: contract axis 0 of both (f32).
        return jax.lax.dot_general(
            a, b, dimension_numbers=(((0,), (0,)), ((), ())),
            preferred_element_type=jnp.float32)

    def _mlp(slab_ref, handles, x):
        h = x
        n = len(handles)
        for i, (wh, bh) in enumerate(handles):
            h = _dot(h, _get(slab_ref, wh)) + _get(slab_ref, bh)
            if i < n - 1:
                h = jnp.maximum(h, 0.0)                  # BN already folded into the Linear
        return h

    def _masked_softmax(s, mask):
        # Matches: S*=mask; S -= where(S!=0, 0, inf); softmax(dim=1);
        #          S = where(S==-inf, 0, S); S*=mask
        # with a guard for rows whose entries are all masked (0/0 in the reference).
        s = s * mask
        s = jnp.where(s != 0.0, s, -jnp.inf)
        mx = jnp.max(s, axis=1, keepdims=True)
        mx = jnp.where(mx > -jnp.inf, mx, 0.0)           # all-masked-row guard
        e = jnp.exp(s - mx)                              # exp(-inf) -> 0
        denom = jnp.sum(e, axis=1, keepdims=True)
        p = e / jnp.maximum(denom, 1e-30)                # exact reciprocal (per review)
        return p * mask

    def kernel(scalars_ref, adj6_ref, x_ref, slab_ref, o_ref):
        # Adj_block = dense adjacency (6 edge-feature channels) . edge_features,
        # done as 6 lane-dense scalar FMAs over [N, N] slabs.
        adj = adj6_ref[0] * scalars_ref[num_eps + 0]
        for k in range(1, 6):
            adj = adj + adj6_ref[k] * scalars_ref[num_eps + k]

        h = x_ref[...]
        for blk in plan["blocks"]:
            # next_layer_update: GIN aggregation + (MLP with folded BN) + ReLU
            for upd in blk["updates"]:
                pooled = _dot(adj, h) + scalars_ref[upd["eps_idx"]] * h
                h = jnp.maximum(_mlp(slab_ref, upd["mlp"], pooled), 0.0)

            # next_layer_pool: aggregation, assignment MLP, masked softmax, contraction
            pooled = _dot(adj, h) + h
            s = _mlp(slab_ref, blk["pool"], pooled)
            s = _masked_softmax(s, _get(slab_ref, blk["mask"]))
            h_new = _dot_t(s, h)                         # S^T @ h
            adj = _dot(_dot_t(s, adj), s)                # (S^T @ A) @ S
            sc = _get(slab_ref, blk["bn_pool"][0])
            sh = _get(slab_ref, blk["bn_pool"][1])
            h = h_new * sc + sh                          # bn_pool (no Linear to fold into)

        # prediction head; F.dropout is identity in eval mode.
        # Final Linear is zero-padded to LANE columns -> lane-dense unmasked store.
        o_ref[...] = _mlp(slab_ref, plan["prediction"], h)

    return kernel


def graphcnn_forward(params, cfg, x_concat, adj3, batch_num_nodes):
    poolings = cfg["poolings"]
    n = x_concat.shape[0]
    num_eps = cfg["update_layers"] * len(poolings)

    # Pooling masks depend only on static graph sizes -> build on host once.
    masks = []
    bnn = list(batch_num_nodes)
    max_nodes = n
    for pnew in poolings:
        masks.append(construct_mask(max_nodes, bnn, pnew))
        bnn = [pnew] * cfg["batch_size"]
        max_nodes = pnew * cfg["batch_size"]

    # Fold BN, pack every parameter + mask into ONE lane-padded VMEM slab (one DMA).
    packer = _SlabPacker(LANE)
    plan = _build_plan(params, cfg, masks, packer)
    slab = packer.finalize()

    # eps + edge_features as a single SMEM scalar vector (one tiny DMA).
    scalars = jnp.concatenate([_f32(params["eps"]), _f32(params["edge_features"])])

    # [N, N, 6] -> [6, N, N] once, so the in-kernel edge contraction is lane-dense.
    # TODO(synk): for large N, tile adjacency with a row-blocked BlockSpec / emit_pipeline
    # instead of a full-array VMEM resident (first VMEM blow-up as N grows, esp. on v7x).
    adj6 = jnp.transpose(_f32(adj3), (2, 0, 1))

    out_nodes = poolings[-1] * cfg["batch_size"]
    kernel = _build_fused_kernel(plan, num_eps)

    out_padded = pl.pallas_call(
        kernel,
        out_shape=jax.ShapeDtypeStruct((out_nodes, LANE), jnp.float32),
        in_specs=[_SMEM, _VMEM, _VMEM, _VMEM],
        out_specs=_VMEM,
        # TODO(synk): when running many independent graph minibatches, add a leading
        # "parallel" grid axis + dimension_semantics so both v7x TensorCores get work.
        compiler_params=pltpu.CompilerParams(vmem_limit_bytes=8 * 1024 * 1024),
    )(scalars, adj6, _f32(x_concat), slab)

    # Lane-dense kernel output; slice back to the true output width.
    return out_padded[:, :cfg["output_dim"]]


if __name__ == "__main__":
    cfg = CFG
    key = jax.random.PRNGKey(0)
    k_param, k_x, k_adj, k_edge = jax.random.split(key, 4)

    graph_sizes = [8, 6]          # nodes per graph in the minibatch (batch_size = 2)
    N = sum(graph_sizes)

    params = init_params(k_param, cfg)

    # X_concat: concatenated node features
    x = jax.random.normal(k_x, (N, cfg["input_dim"]), jnp.float32)

    # Dense block-diagonal batched adjacency with 6-dim edge features per present edge
    block = np.zeros((N, N), np.float32)
    s0 = 0
    for nn_ in graph_sizes:
        block[s0:s0 + nn_, s0:s0 + nn_] = 1.0
        s0 += nn_
    edge_exist = (jax.random.uniform(k_edge, (N, N)) < 0.6).astype(jnp.float32) * jnp.asarray(block)
    adj3 = jax.random.normal(k_adj, (N, N, 6), jnp.float32) * edge_exist[:, :, None]

    out = graphcnn_forward(params, cfg, x, adj3, graph_sizes)
    out = jax.block_until_ready(out)

    assert out.shape == (cfg["poolings"][-1] * cfg["batch_size"], cfg["output_dim"]), out.shape
    assert bool(jnp.all(jnp.isfinite(out)))
    print("KERNEL_OK")
</pallas_src>

<mosaic_0001>
module attributes {stable_mosaic.version = 11 : i64} {
  func.func @kernel(%arg0: memref<10xf32, #tpu.memory_space<smem>>, %arg1: memref<6x14x14xf32, #tpu.memory_space<vmem>>, %arg2: memref<14x4xf32, #tpu.memory_space<vmem>>, %arg3: memref<464x128xf32, #tpu.memory_space<vmem>>, %arg4: memref<4x128xf32, #tpu.memory_space<vmem>>) attributes {dimension_semantics = [], scalar_prefetch = 0 : i64, scratch_operands = 0 : i64, tpu.core_type = #tpu.core_type<tc>} {
    %c0 = arith.constant 0 : index
    %c0_0 = arith.constant 0 : index
    %c0_1 = arith.constant 0 : index
    %0 = vector.load %arg1[%c0, %c0_0, %c0_1] : memref<6x14x14xf32, #tpu.memory_space<vmem>>, vector<1x14x14xf32>
    %1 = vector.shape_cast %0 : vector<1x14x14xf32> to vector<14x14xf32>
    %c4 = arith.constant 4 : index
    %2 = memref.load %arg0[%c4] : memref<10xf32, #tpu.memory_space<smem>>
    %3 = vector.broadcast %2 : f32 to vector<14x14xf32>
    %4 = arith.mulf %1, %3 : vector<14x14xf32>
    %c1 = arith.constant 1 : index
    %c0_2 = arith.constant 0 : index
    %c0_3 = arith.constant 0 : index
    %5 = vector.load %arg1[%c1, %c0_2, %c0_3] : memref<6x14x14xf32, #tpu.memory_space<vmem>>, vector<1x14x14xf32>
    %6 = vector.shape_cast %5 : vector<1x14x14xf32> to vector<14x14xf32>
    %c5 = arith.constant 5 : index
    %7 = memref.load %arg0[%c5] : memref<10xf32, #tpu.memory_space<smem>>
    %8 = vector.broadcast %7 : f32 to vector<14x14xf32>
    %9 = arith.mulf %6, %8 : vector<14x14xf32>
    %10 = arith.addf %4, %9 : vector<14x14xf32>
    %c2 = arith.constant 2 : index
    %c0_4 = arith.constant 0 : index
    %c0_5 = arith.constant 0 : index
    %11 = vector.load %arg1[%c2, %c0_4, %c0_5] : memref<6x14x14xf32, #tpu.memory_space<vmem>>, vector<1x14x14xf32>
    %12 = vector.shape_cast %11 : vector<1x14x14xf32> to vector<14x14xf32>
    %c6 = arith.constant 6 : index
    %13 = memref.load %arg0[%c6] : memref<10xf32, #tpu.memory_space<smem>>
    %14 = vector.broadcast %13 : f32 to vector<14x14xf32>
    %15 = arith.mulf %12, %14 : vector<14x14xf32>
    %16 = arith.addf %10, %15 : vector<14x14xf32>
    %c3 = arith.constant 3 : index
    %c0_6 = arith.constant 0 : index
    %c0_7 = arith.constant 0 : index
    %17 = vector.load %arg1[%c3, %c0_6, %c0_7] : memref<6x14x14xf32, #tpu.memory_space<vmem>>, vector<1x14x14xf32>
    %18 = vector.shape_cast %17 : vector<1x14x14xf32> to vector<14x14xf32>
    %c7 = arith.constant 7 : index
    %19 = memref.load %arg0[%c7] : memref<10xf32, #tpu.memory_space<smem>>
    %20 = vector.broadcast %19 : f32 to vector<14x14xf32>
    %21 = arith.mulf %18, %20 : vector<14x14xf32>
    %22 = arith.addf %16, %21 : vector<14x14xf32>
    %c4_8 = arith.constant 4 : index
    %c0_9 = arith.constant 0 : index
    %c0_10 = arith.constant 0 : index
    %23 = vector.load %arg1[%c4_8, %c0_9, %c0_10] : memref<6x14x14xf32, #tpu.memory_space<vmem>>, vector<1x14x14xf32>
    %24 = vector.shape_cast %23 : vector<1x14x14xf32> to vector<14x14xf32>
    %c8 = arith.constant 8 : index
    %25 = memref.load %arg0[%c8] : memref<10xf32, #tpu.memory_space<smem>>
    %26 = vector.broadcast %25 : f32 to vector<14x14xf32>
    %27 = arith.mulf %24, %26 : vector<14x14xf32>
    %28 = arith.addf %22, %27 : vector<14x14xf32>
    %c5_11 = arith.constant 5 : index
    %c0_12 = arith.constant 0 : index
    %c0_13 = arith.constant 0 : index
    %29 = vector.load %arg1[%c5_11, %c0_12, %c0_13] : memref<6x14x14xf32, #tpu.memory_space<vmem>>, vector<1x14x14xf32>
    %30 = vector.shape_cast %29 : vector<1x14x14xf32> to vector<14x14xf32>
    %c9 = arith.constant 9 : index
    %31 = memref.load %arg0[%c9] : memref<10xf32, #tpu.memory_space<smem>>
    %32 = vector.broadcast %31 : f32 to vector<14x14xf32>
    %33 = arith.mulf %30, %32 : vector<14x14xf32>
    %34 = arith.addf %28, %33 : vector<14x14xf32>
    %c0_14 = arith.constant 0 : index
    %c0_15 = arith.constant 0 : index
    %35 = vector.load %arg2[%c0_14, %c0_15] : memref<14x4xf32, #tpu.memory_space<vmem>>, vector<14x4xf32>
    %cst = arith.constant dense<0.000000e+00> : vector<14x4xf32>
    %36 = tpu.matmul %34, %35, %cst {dimension_numbers = #tpu.dot_dimension_numbers<[1], [0], [0], [1], [0, 0, 1, 1], [], []>} : vector<14x14xf32>, vector<14x4xf32>, vector<14x4xf32> -> vector<14x4xf32>
    %c0_16 = arith.constant 0 : index
    %37 = memref.load %arg0[%c0_16] : memref<10xf32, #tpu.memory_space<smem>>
    %38 = vector.broadcast %37 : f32 to vector<14x4xf32>
    %39 = arith.mulf %38, %35 : vector<14x4xf32>
    %40 = arith.addf %36, %39 : vector<14x4xf32>
    %c0_17 = arith.constant 0 : index
    %c0_18 = arith.constant 0 : index
    %41 = vector.load %arg3[%c0_17, %c0_18] : memref<464x128xf32, #tpu.memory_space<vmem>>, vector<4x32xf32>
    %cst_19 = arith.constant dense<0.000000e+00> : vector<14x32xf32>
    %42 = tpu.matmul %40, %41, %cst_19 {dimension_numbers = #tpu.dot_dimension_numbers<[1], [0], [0], [1], [0, 0, 1, 1], [], []>} : vector<14x4xf32>, vector<4x32xf32>, vector<14x32xf32> -> vector<14x32xf32>
    %c8_20 = arith.constant 8 : index
    %c0_21 = arith.constant 0 : index
    %43 = vector.load %arg3[%c8_20, %c0_21] : memref<464x128xf32, #tpu.memory_space<vmem>>, vector<1x32xf32>
    %44 = vector.broadcast %43 : vector<1x32xf32> to vector<14x32xf32>
    %45 = arith.addf %42, %44 : vector<14x32xf32>
    %cst_22 = arith.constant 0.000000e+00 : f32
    %46 = vector.broadcast %cst_22 : f32 to vector<14x32xf32>
    %47 = arith.maximumf %45, %46 : vector<14x32xf32>
    %c16 = arith.constant 16 : index
    %c0_23 = arith.constant 0 : index
    %48 = vector.load %arg3[%c16, %c0_23] : memref<464x128xf32, #tpu.memory_space<vmem>>, vector<32x32xf32>
    %cst_24 = arith.constant dense<0.000000e+00> : vector<14x32xf32>
    %49 = tpu.matmul %47, %48, %cst_24 {dimension_numbers = #tpu.dot_dimension_numbers<[1], [0], [0], [1], [0, 0, 1, 1], [], []>} : vector<14x32xf32>, vector<32x32xf32>, vector<14x32xf32> -> vector<14x32xf32>
    %c48 = arith.constant 48 : index
    %c0_25 = arith.constant 0 : index
    %50 = vector.load %arg3[%c48, %c0_25] : memref<464x128xf32, #tpu.memory_space<vmem>>, vector<1x32xf32>
    %51 = vector.broadcast %50 : vector<1x32xf32> to vector<14x32xf32>
    %52 = arith.addf %49, %51 : vector<14x32xf32>
    %cst_26 = arith.constant 0.000000e+00 : f32
    %53 = vector.broadcast %cst_26 : f32 to vector<14x32xf32>
    %54 = arith.maximumf %52, %53 : vector<14x32xf32>
    %cst_27 = arith.constant dense<0.000000e+00> : vector<14x32xf32>
    %55 = tpu.matmul %34, %54, %cst_27 {dimension_numbers = #tpu.dot_dimension_numbers<[1], [0], [0], [1], [0, 0, 1, 1], [], []>} : vector<14x14xf32>, vector<14x32xf32>, vector<14x32xf32> -> vector<14x32xf32>
    %56 = arith.addf %55, %54 : vector<14x32xf32>
    %c56 = arith.constant 56 : index
    %c0_28 = arith.constant 0 : index
    %57 = vector.load %arg3[%c56, %c0_28] : memref<464x128xf32, #tpu.memory_space<vmem>>, vector<32x32xf32>
    %cst_29 = arith.constant dense<0.000000e+00> : vector<14x32xf32>
    %58 = tpu.matmul %56, %57, %cst_29 {dimension_numbers = #tpu.dot_dimension_numbers<[1], [0], [0], [1], [0, 0, 1, 1], [], []>} : vector<14x32xf32>, vector<32x32xf32>, vector<14x32xf32> -> vector<14x32xf32>
    %c88 = arith.constant 88 : index
    %c0_30 = arith.constant 0 : index
    %59 = vector.load %arg3[%c88, %c0_30] : memref<464x128xf32, #tpu.memory_space<vmem>>, vector<1x32xf32>
    %60 = vector.broadcast %59 : vector<1x32xf32> to vector<14x32xf32>
    %61 = arith.addf %58, %60 : vector<14x32xf32>
    %cst_31 = arith.constant 0.000000e+00 : f32
    %62 = vector.broadcast %cst_31 : f32 to vector<14x32xf32>
    %63 = arith.maximumf %61, %62 : vector<14x32xf32>
    %c96 = arith.constant 96 : index
    %c0_32 = arith.constant 0 : index
    %64 = vector.load %arg3[%c96, %c0_32] : memref<464x128xf32, #tpu.memory_space<vmem>>, vector<32x8xf32>
    %cst_33 = arith.constant dense<0.000000e+00> : vector<14x8xf32>
    %65 = tpu.matmul %63, %64, %cst_33 {dimension_numbers = #tpu.dot_dimension_numbers<[1], [0], [0], [1], [0, 0, 1, 1], [], []>} : vector<14x32xf32>, vector<32x8xf32>, vector<14x8xf32> -> vector<14x8xf32>
    %c128 = arith.constant 128 : index
    %c0_34 = arith.constant 0 : index
    %66 = vector.load %arg3[%c128, %c0_34] : memref<464x128xf32, #tpu.memory_space<vmem>>, vector<1x8xf32>
    %67 = vector.broadcast %66 : vector<1x8xf32> to vector<14x8xf32>
    %68 = arith.addf %65, %67 : vector<14x8xf32>
    %c152 = arith.constant 152 : index
    %c0_35 = arith.constant 0 : index
    %69 = vector.load %arg3[%c152, %c0_35] : memref<464x128xf32, #tpu.memory_space<vmem>>, vector<14x8xf32>
    %70 = arith.mulf %68, %69 : vector<14x8xf32>
    %cst_36 = arith.constant 0.000000e+00 : f32
    %71 = vector.broadcast %cst_36 : f32 to vector<14x8xf32>
    %72 = arith.cmpf one, %70, %71 : vector<14x8xf32>
    %cst_37 = arith.constant 0xFF800000 : f32
    %73 = vector.broadcast %cst_37 : f32 to vector<14x8xf32>
    %74 = arith.select %72, %70, %73 : vector<14x8xi1>, vector<14x8xf32>
    %cst_38 = arith.constant dense<0xFF800000> : vector<14xf32>
    %75 = vector.multi_reduction <maximumf>, %74, %cst_38 [1] : vector<14x8xf32> to vector<14xf32>
    %76 = vector.shape_cast %75 : vector<14xf32> to vector<14x1xf32>
    %cst_39 = arith.constant 0xFF800000 : f32
    %77 = vector.broadcast %cst_39 : f32 to vector<14x1xf32>
    %78 = arith.cmpf ogt, %76, %77 : vector<14x1xf32>
    %cst_40 = arith.constant 0.000000e+00 : f32
    %79 = vector.broadcast %cst_40 : f32 to vector<14x1xf32>
    %80 = arith.select %78, %76, %79 : vector<14x1xi1>, vector<14x1xf32>
    %81 = vector.broadcast %80 : vector<14x1xf32> to vector<14x8xf32>
    %82 = arith.subf %74, %81 : vector<14x8xf32>
    %83 = math.exp %82 : vector<14x8xf32>
    %cst_41 = arith.constant dense<0.000000e+00> : vector<14xf32>
    %84 = vector.multi_reduction <add>, %83, %cst_41 [1] : vector<14x8xf32> to vector<14xf32>
    %85 = vector.shape_cast %84 : vector<14xf32> to vector<14x1xf32>
    %cst_42 = arith.constant 1.000000e-30 : f32
    %86 = vector.broadcast %cst_42 : f32 to vector<14x1xf32>
    %87 = arith.maximumf %85, %86 : vector<14x1xf32>
    %88 = vector.broadcast %87 : vector<14x1xf32> to vector<14x8xf32>
    %89 = arith.divf %83, %88 : vector<14x8xf32>
    %90 = arith.mulf %89, %69 : vector<14x8xf32>
    %cst_43 = arith.constant dense<0.000000e+00> : vector<8x32xf32>
    %91 = tpu.matmul %90, %54, %cst_43 {dimension_numbers = #tpu.dot_dimension_numbers<[0], [0], [1], [1], [0, 1, 1, 1], [], []>} : vector<14x8xf32>, vector<14x32xf32>, vector<8x32xf32> -> vector<8x32xf32>
    %cst_44 = arith.constant dense<0.000000e+00> : vector<8x14xf32>
    %92 = tpu.matmul %90, %34, %cst_44 {dimension_numbers = #tpu.dot_dimension_numbers<[0], [0], [1], [1], [0, 1, 1, 1], [], []>} : vector<14x8xf32>, vector<14x14xf32>, vector<8x14xf32> -> vector<8x14xf32>
    %cst_45 = arith.constant dense<0.000000e+00> : vector<8x8xf32>
    %93 = tpu.matmul %92, %90, %cst_45 {dimension_numbers = #tpu.dot_dimension_numbers<[1], [0], [0], [1], [0, 0, 1, 1], [], []>} : vector<8x14xf32>, vector<14x8xf32>, vector<8x8xf32> -> vector<8x8xf32>
    %c136 = arith.constant 136 : index
    %c0_46 = arith.constant 0 : index
    %94 = vector.load %arg3[%c136, %c0_46] : memref<464x128xf32, #tpu.memory_space<vmem>>, vector<1x32xf32>
    %c144 = arith.constant 144 : index
    %c0_47 = arith.constant 0 : index
    %95 = vector.load %arg3[%c144, %c0_47] : memref<464x128xf32, #tpu.memory_space<vmem>>, vector<1x32xf32>
    %96 = vector.broadcast %94 : vector<1x32xf32> to vector<8x32xf32>
    %97 = arith.mulf %91, %96 : vector<8x32xf32>
    %98 = vector.broadcast %95 : vector<1x32xf32> to vector<8x32xf32>
    %99 = arith.addf %97, %98 : vector<8x32xf32>
    %cst_48 = arith.constant dense<0.000000e+00> : vector<8x32xf32>
    %100 = tpu.matmul %93, %99, %cst_48 {dimension_numbers = #tpu.dot_dimension_numbers<[1], [0], [0], [1], [0, 0, 1, 1], [], []>} : vector<8x8xf32>, vector<8x32xf32>, vector<8x32xf32> -> vector<8x32xf32>
    %c2_49 = arith.constant 2 : index
    %101 = memref.load %arg0[%c2_49] : memref<10xf32, #tpu.memory_space<smem>>
    %102 = vector.broadcast %101 : f32 to vector<8x32xf32>
    %103 = arith.mulf %102, %99 : vector<8x32xf32>
    %104 = arith.addf %100, %103 : vector<8x32xf32>
    %c168 = arith.constant 168 : index
    %c0_50 = arith.constant 0 : index
    %105 = vector.load %arg3[%c168, %c0_50] : memref<464x128xf32, #tpu.memory_space<vmem>>, vector<32x32xf32>
    %cst_51 = arith.constant dense<0.000000e+00> : vector<8x32xf32>
    %106 = tpu.matmul %104, %105, %cst_51 {dimension_numbers = #tpu.dot_dimension_numbers<[1], [0], [0], [1], [0, 0, 1, 1], [], []>} : vector<8x32xf32>, vector<32x32xf32>, vector<8x32xf32> -> vector<8x32xf32>
    %c200 = arith.constant 200 : index
    %c0_52 = arith.constant 0 : index
    %107 = vector.load %arg3[%c200, %c0_52] : memref<464x128xf32, #tpu.memory_space<vmem>>, vector<1x32xf32>
    %108 = vector.broadcast %107 : vector<1x32xf32> to vector<8x32xf32>
    %109 = arith.addf %106, %108 : vector<8x32xf32>
    %cst_53 = arith.constant 0.000000e+00 : f32
    %110 = vector.broadcast %cst_53 : f32 to vector<8x32xf32>
    %111 = arith.maximumf %109, %110 : vector<8x32xf32>
    %c208 = arith.constant 208 : index
    %c0_54 = arith.constant 0 : index
    %112 = vector.load %arg3[%c208, %c0_54] : memref<464x128xf32, #tpu.memory_space<vmem>>, vector<32x32xf32>
    %cst_55 = arith.constant dense<0.000000e+00> : vector<8x32xf32>
    %113 = tpu.matmul %111, %112, %cst_55 {dimension_numbers = #tpu.dot_dimension_numbers<[1], [0], [0], [1], [0, 0, 1, 1], [], []>} : vector<8x32xf32>, vector<32x32xf32>, vector<8x32xf32> -> vector<8x32xf32>
    %c240 = arith.constant 240 : index
    %c0_56 = arith.constant 0 : index
    %114 = vector.load %arg3[%c240, %c0_56] : memref<464x128xf32, #tpu.memory_space<vmem>>, vector<1x32xf32>
    %115 = vector.broadcast %114 : vector<1x32xf32> to vector<8x32xf32>
    %116 = arith.addf %113, %115 : vector<8x32xf32>
    %cst_57 = arith.constant 0.000000e+00 : f32
    %117 = vector.broadcast %cst_57 : f32 to vector<8x32xf32>
    %118 = arith.maximumf %116, %117 : vector<8x32xf32>
    %cst_58 = arith.constant dense<0.000000e+00> : vector<8x32xf32>
    %119 = tpu.matmul %93, %118, %cst_58 {dimension_numbers = #tpu.dot_dimension_numbers<[1], [0], [0], [1], [0, 0, 1, 1], [], []>} : vector<8x8xf32>, vector<8x32xf32>, vector<8x32xf32> -> vector<8x32xf32>
    %120 = arith.addf %119, %118 : vector<8x32xf32>
    %c248 = arith.constant 248 : index
    %c0_59 = arith.constant 0 : index
    %121 = vector.load %arg3[%c248, %c0_59] : memref<464x128xf32, #tpu.memory_space<vmem>>, vector<32x32xf32>
    %cst_60 = arith.constant dense<0.000000e+00> : vector<8x32xf32>
    %122 = tpu.matmul %120, %121, %cst_60 {dimension_numbers = #tpu.dot_dimension_numbers<[1], [0], [0], [1], [0, 0, 1, 1], [], []>} : vector<8x32xf32>, vector<32x32xf32>, vector<8x32xf32> -> vector<8x32xf32>
    %c280 = arith.constant 280 : index
    %c0_61 = arith.constant 0 : index
    %123 = vector.load %arg3[%c280, %c0_61] : memref<464x128xf32, #tpu.memory_space<vmem>>, vector<1x32xf32>
    %124 = vector.broadcast %123 : vector<1x32xf32> to vector<8x32xf32>
    %125 = arith.addf %122, %124 : vector<8x32xf32>
    %cst_62 = arith.constant 0.000000e+00 : f32
    %126 = vector.broadcast %cst_62 : f32 to vector<8x32xf32>
    %127 = arith.maximumf %125, %126 : vector<8x32xf32>
    %c288 = arith.constant 288 : index
    %c0_63 = arith.constant 0 : index
    %128 = vector.load %arg3[%c288, %c0_63] : memref<464x128xf32, #tpu.memory_space<vmem>>, vector<32x4xf32>
    %cst_64 = arith.constant dense<0.000000e+00> : vector<8x4xf32>
    %129 = tpu.matmul %127, %128, %cst_64 {dimension_numbers = #tpu.dot_dimension_numbers<[1], [0], [0], [1], [0, 0, 1, 1], [], []>} : vector<8x32xf32>, vector<32x4xf32>, vector<8x4xf32> -> vector<8x4xf32>
    %c320 = arith.constant 320 : index
    %c0_65 = arith.constant 0 : index
    %130 = vector.load %arg3[%c320, %c0_65] : memref<464x128xf32, #tpu.memory_space<vmem>>, vector<1x4xf32>
    %131 = vector.broadcast %130 : vector<1x4xf32> to vector<8x4xf32>
    %132 = arith.addf %129, %131 : vector<8x4xf32>
    %c344 = arith.constant 344 : index
    %c0_66 = arith.constant 0 : index
    %133 = vector.load %arg3[%c344, %c0_66] : memref<464x128xf32, #tpu.memory_space<vmem>>, vector<8x4xf32>
    %134 = arith.mulf %132, %133 : vector<8x4xf32>
    %cst_67 = arith.constant 0.000000e+00 : f32
    %135 = vector.broadcast %cst_67 : f32 to vector<8x4xf32>
    %136 = arith.cmpf one, %134, %135 : vector<8x4xf32>
    %cst_68 = arith.constant 0xFF800000 : f32
    %137 = vector.broadcast %cst_68 : f32 to vector<8x4xf32>
    %138 = arith.select %136, %134, %137 : vector<8x4xi1>, vector<8x4xf32>
    %cst_69 = arith.constant dense<0xFF800000> : vector<8xf32>
    %139 = vector.multi_reduction <maximumf>, %138, %cst_69 [1] : vector<8x4xf32> to vector<8xf32>
    %140 = vector.shape_cast %139 : vector<8xf32> to vector<8x1xf32>
    %cst_70 = arith.constant 0xFF800000 : f32
    %141 = vector.broadcast %cst_70 : f32 to vector<8x1xf32>
    %142 = arith.cmpf ogt, %140, %141 : vector<8x1xf32>
    %cst_71 = arith.constant 0.000000e+00 : f32
    %143 = vector.broadcast %cst_71 : f32 to vector<8x1xf32>
    %144 = arith.select %142, %140, %143 : vector<8x1xi1>, vector<8x1xf32>
    %145 = vector.broadcast %144 : vector<8x1xf32> to vector<8x4xf32>
    %146 = arith.subf %138, %145 : vector<8x4xf32>
    %147 = math.exp %146 : vector<8x4xf32>
    %cst_72 = arith.constant dense<0.000000e+00> : vector<8xf32>
    %148 = vector.multi_reduction <add>, %147, %cst_72 [1] : vector<8x4xf32> to vector<8xf32>
    %149 = vector.shape_cast %148 : vector<8xf32> to vector<8x1xf32>
    %cst_73 = arith.constant 1.000000e-30 : f32
    %150 = vector.broadcast %cst_73 : f32 to vector<8x1xf32>
    %151 = arith.maximumf %149, %150 : vector<8x1xf32>
    %152 = vector.broadcast %151 : vector<8x1xf32> to vector<8x4xf32>
    %153 = arith.divf %147, %152 : vector<8x4xf32>
    %154 = arith.mulf %153, %133 : vector<8x4xf32>
    %cst_74 = arith.constant dense<0.000000e+00> : vector<4x32xf32>
    %155 = tpu.matmul %154, %118, %cst_74 {dimension_numbers = #tpu.dot_dimension_numbers<[0], [0], [1], [1], [0, 1, 1, 1], [], []>} : vector<8x4xf32>, vector<8x32xf32>, vector<4x32xf32> -> vector<4x32xf32>
    %c328 = arith.constant 328 : index
    %c0_75 = arith.constant 0 : index
    %156 = vector.load %arg3[%c328, %c0_75] : memref<464x128xf32, #tpu.memory_space<vmem>>, vector<1x32xf32>
    %c336 = arith.constant 336 : index
    %c0_76 = arith.constant 0 : index
    %157 = vector.load %arg3[%c336, %c0_76] : memref<464x128xf32, #tpu.memory_space<vmem>>, vector<1x32xf32>
    %158 = vector.broadcast %156 : vector<1x32xf32> to vector<4x32xf32>
    %159 = arith.mulf %155, %158 : vector<4x32xf32>
    %160 = vector.broadcast %157 : vector<1x32xf32> to vector<4x32xf32>
    %161 = arith.addf %159, %160 : vector<4x32xf32>
    %c352 = arith.constant 352 : index
    %c0_77 = arith.constant 0 : index
    %162 = vector.load %arg3[%c352, %c0_77] : memref<464x128xf32, #tpu.memory_space<vmem>>, vector<32x64xf32>
    %cst_78 = arith.constant dense<0.000000e+00> : vector<4x64xf32>
    %163 = tpu.matmul %161, %162, %cst_78 {dimension_numbers = #tpu.dot_dimension_numbers<[1], [0], [0], [1], [0, 0, 1, 1], [], []>} : vector<4x32xf32>, vector<32x64xf32>, vector<4x64xf32> -> vector<4x64xf32>
    %c384 = arith.constant 384 : index
    %c0_79 = arith.constant 0 : index
    %164 = vector.load %arg3[%c384, %c0_79] : memref<464x128xf32, #tpu.memory_space<vmem>>, vector<1x64xf32>
    %165 = vector.broadcast %164 : vector<1x64xf32> to vector<4x64xf32>
    %166 = arith.addf %163, %165 : vector<4x64xf32>
    %cst_80 = arith.constant 0.000000e+00 : f32
    %167 = vector.broadcast %cst_80 : f32 to vector<4x64xf32>
    %168 = arith.maximumf %166, %167 : vector<4x64xf32>
    %c392 = arith.constant 392 : index
    %c0_81 = arith.constant 0 : index
    %169 = vector.load %arg3[%c392, %c0_81] : memref<464x128xf32, #tpu.memory_space<vmem>>, vector<64x128xf32>
    %cst_82 = arith.constant dense<0.000000e+00> : vector<4x128xf32>
    %170 = tpu.matmul %168, %169, %cst_82 {dimension_numbers = #tpu.dot_dimension_numbers<[1], [0], [0], [1], [0, 0, 1, 1], [], []>} : vector<4x64xf32>, vector<64x128xf32>, vector<4x128xf32> -> vector<4x128xf32>
    %c456 = arith.constant 456 : index
    %c0_83 = arith.constant 0 : index
    %171 = vector.load %arg3[%c456, %c0_83] : memref<464x128xf32, #tpu.memory_space<vmem>>, vector<1x128xf32>
    %172 = vector.broadcast %171 : vector<1x128xf32> to vector<4x128xf32>
    %173 = arith.addf %170, %172 : vector<4x128xf32>
    %c0_84 = arith.constant 0 : index
    %c0_85 = arith.constant 0 : index
    %174 = vector.load %arg4[%c0_84, %c0_85] : memref<4x128xf32, #tpu.memory_space<vmem>>, vector<4x128xf32>
    tpu.vector_store %arg4[%c0_84, %c0_85], %173 {strides = array<i32>} : memref<4x128xf32, #tpu.memory_space<vmem>>, vector<4x128xf32>,
    return
  }
}

</mosaic_0001>

<bundles_post_ra>
// kernel: tpu_custom_call.1
= control target key start
LH: loop header
LB: loop body
LE: loop exit
PB: predicated region body
PF: predicated region fallthrough
CT: control target
= control target key end

     0   :  { %9 = vsyncpa [#allocation5], 0  ;;  %s2312_s0 = inlined_call_operand.vmem [shape: f32[10], index: 0, kind: input, shape index: {}]   ;;  %s2313_s1 = inlined_call_operand.hbm [shape: f32[6,14,14], index: 1, kind: input, shape index: {}]   ;;  %s2314_s2 = inlined_call_operand.vmem [shape: f32[14,4], index: 2, kind: input, shape index: {}]   ;;  %s2315_s3 = inlined_call_operand.hbm [shape: f32[464,128], index: 3, kind: input, shape index: {}]   ;;  %s2316_s4 = inlined_call_operand.hbm [shape: f32[4,128], index: 4, kind: output, shape index: {}]  }
   0x1   :  { %10 = vsyncpa [#allocation3], 0 }
   0x2   :  { %11 = vsyncpa [#allocation8], 0 }
   0x3   :  { %12 = vsyncpa [#allocation4], 0  ;;  %s19_s17 = sshll.u32 %s2312_s0, 4  ;;  %s20_s17 = int_to_ptr.vmem [resolvable:$true] %s19_s17 }
   0x4   :  { %s2066_s18 = scalar_lea.vmem %s20_s17, 16  ;;  %p2071_p1 = scmp.lt.s32.totalorder %s20_s17, %s20_s17 }
   0x5   :  { %p2067_p0 = scmp.ne.s32.totalorder %s20_s17, %s2066_s18  ;;  %p2072_p2 = scmp.lt.s32.totalorder %s2066_s18, %s2066_s18 }
   0x7   :  { %p2073_p3 = por %p2072_p2, %p2071_p1 }
   0x9   :  { %p2074_p4 = pnand %p2073_p3, %p2067_p0 }
   0xb   :  { %2077 = shalt.err (!%p2074_p4)
}
   0xc   :  { %s2146_s19 = smov [#allocation2]   ;;  %s2147_s20 = smov [#allocation6]  }
   0xd   :  { %22 = dma.vmem_to_smem %s20_s17, 16, %s2146_s19, [#allocation5]  }
   0xe   :  { %s28_s21 = sshll.u32 %s2147_s20, 4  ;;  %s29_s21 = int_to_ptr.vmem [resolvable:$true] %s28_s21 }
   0xf   :  { %s2086_s22 = scalar_lea.vmem %s29_s21, 1536  ;;  %p2091_p6 = scmp.lt.s32.totalorder %s29_s21, %s29_s21 }
  0x10   :  { %p2087_p5 = scmp.ne.s32.totalorder %s29_s21, %s2086_s22  ;;  %p2092_p7 = scmp.lt.s32.totalorder %s2086_s22, %s2086_s22 }
  0x12   :  { %p2093_p8 = por %p2092_p7, %p2091_p6 }
  0x14   :  { %p2094_p9 = pnand %p2093_p8, %p2087_p5 }
  0x16   :  { %2097 = shalt.err (!%p2094_p9)
}
  0x17   :  { %s2148_s0 = smov 128   ;;  %s2149_s23 = smov 8  }
  0x18   :  { %34 = dma.hbm_to_vmem [thread:$0]  %s2313_s1, 1536, %s29_s21, [#allocation3], %s2148_s0, %s2148_s0, %s2149_s23  }
  0x19   :  { %s2150_s26 = smov [#allocation7]  }
  0x1a   :  { %s42_s27 = sshll.u32 %s2150_s26, 4  ;;  %s43_s27 = int_to_ptr.vmem [resolvable:$true] %s42_s27 }
  0x1b   :  { %s2106_s28 = scalar_lea.vmem %s43_s27, 7424  ;;  %p2111_p11 = scmp.lt.s32.totalorder %s43_s27, %s43_s27 }
  0x1c   :  { %p2107_p10 = scmp.ne.s32.totalorder %s43_s27, %s2106_s28  ;;  %p2112_p12 = scmp.lt.s32.totalorder %s2106_s28, %s2106_s28 }
  0x1e   :  { %p2113_p13 = por %p2112_p12, %p2111_p11 }
  0x20   :  { %p2114_p0 = pnand %p2113_p13, %p2107_p10 }
  0x22   :  { %2117 = shalt.err (!%p2114_p0)
}
  0x23   :  { %48 = dma.hbm_to_vmem [thread:$0]  %s2315_s3, 7424, %s43_s27, [#allocation8], %s2148_s0, %s2148_s0, %s2149_s23  }
  0x24   :  { %2138 = dma.done.wait [#allocation5], 16  }
  0x25   :  { %2139 = vsyncadd [#allocation5], 4294967280 }
  0x26   :  { %2140 = dma.done.wait [#allocation3], 1536  }
  0x27   :  { %2141 = vsyncadd [#allocation3], 4294965760 }
  0x28   :  { %2142 = dma.done.wait [#allocation8], 7424  }
  0x29   :  { %2143 = vsyncadd [#allocation8], 4294959872 }
  0x2a   :  { %58 = sfence }
  0x2b   :  { %v2191_v0 = vld [vmem:[%s2314_s2 + $0x8] sm:$0x3f]  ;;  %vm123_vm0 = vcmask 1045504   ;;  %v110_v1 = vld [vmem:[%s2314_s2] sm:$0xff]  ;;  %s1755_s3 = sld [smem:[#allocation2 + $0x4]]  ;;  %v66_v4 = vld [vmem:[#allocation6 + $0x10] sm:$0xff] }
  0x2c   :  { %1884 = vmatprep.subr.msk.mxu0 %vm123_vm0, %v2191_v0  ;;  %s1756_s8 = sld [smem:[#allocation2 + $0x5]]  ;;  %v59_v2 = vld [vmem:[#allocation6] sm:$0xff]  ;;  %v60_v3 = vld [vmem:[#allocation6 + $0x8] sm:$0x3f]  ;;  %v67_v5 = vld [vmem:[#allocation6 + $0x18] sm:$0x3f] }
  0x2d   :  { %1885 = vmatpush3.msk.msra.mxu0 %vm123_vm0, %v2191_v0  ;;  %s1757_s9 = sld [smem:[#allocation2 + $0x6]]  ;;  %v75_v7 = vld [vmem:[#allocation6 + $0x20] sm:$0xff]  ;;  %v76_v8 = vld [vmem:[#allocation6 + $0x28] sm:$0x3f]  ;;  %v84_v12 = vld [vmem:[#allocation6 + $0x30] sm:$0xff]  ;;  %vm116_vm1 = vcmask 113664  }
  0x2e   :  { %1886 = vmatprep.subr.mxu0 %v110_v1  ;;  %s1758_s10 = sld [smem:[#allocation2 + $0x7]]  ;;  %v85_v16 = vld [vmem:[#allocation6 + $0x38] sm:$0x3f]  ;;  %v93_v20 = vld [vmem:[#allocation6 + $0x40] sm:$0xff]  ;;  %v94_v23 = vld [vmem:[#allocation6 + $0x48] sm:$0x3f] }
  0x2f   :  { %1887 = vmatpush3.msra.mxu0 %v110_v1  ;;  %s1759_s11 = sld [smem:[#allocation2 + $0x8]]  ;;  %v102_v26 = vld [vmem:[#allocation6 + $0x50] sm:$0xff]  ;;  %v103_v31 = vld [vmem:[#allocation6 + $0x58] sm:$0x3f]  ;;  %v202_v42 = vld [vmem:[#allocation7] sm:$0xf] }
  0x30   :  { %s2200_s12 = sld [smem:[#allocation2 + $0x9]]  ;;  %vm215_vm2 = vcmask 1043456   ;;  %vm208_vm3 = vcmask 31744   ;;  %v299_v50 = vld [vmem:[#allocation7 + $0x28] sm:$0xff]  ;;  %v298_v51 = vld [vmem:[#allocation7 + $0x20] sm:$0xff]  ;;  %v297_v52 = vld [vmem:[#allocation7 + $0x18] sm:$0xff] }
  0x31   :  { %v62_v6 = vstv %s1755_s3  ;;  %1891 = vmatprep.subr.msk.mxu1 %vm215_vm2, %v202_v42  ;;  %s112_s2 = sld [smem:[#allocation2]]  ;;  %v296_v53 = vld [vmem:[#allocation7 + $0x10] sm:$0xff]  ;;  %v1764_v54 = vld [vmem:[#allocation7 + $0x8] ss:$0 sm:$0xff]  ;;  %vm305_vm4 = vcmask 261120   ;;  %vm657_vm5 = vcmask 64512  }
  0x32   :  { %v63_v9 = vmul.f32 %v62_v6, %v59_v2  ;;  %v64_v10 = vmul.f32 %v62_v6, %v60_v3  ;;  %v69_v11 = vstv %s1756_s8  ;;  %1892 = vmatpush3.msk.msra.mxu1 %vm215_vm2, %v202_v42  ;;  %v1768_v61 = vld [vmem:[#allocation7 + $0x30] ss:$0 sm:$0xff]  ;;  %v468_v6 = vld [vmem:[#allocation7 + $0x40] sm:$0xff]  ;;  %vm661_vm8 = vcmask 62464   ;;  %s1788_s13 = sld [smem:[#allocation2 + $0x2]]  ;;  %s2153_s14 = smov [#allocation9]  }
  0x33   :  { %v70_v13 = vmul.f32 %v69_v11, %v66_v4  ;;  %v71_v14 = vmul.f32 %v69_v11, %v67_v5  ;;  %v78_v15 = vstv %s1757_s9  ;;  %1896 = vmatprep.subr.mxu1 %v299_v50  ;;  %v470_v4 = vld [vmem:[#allocation7 + $0x50] sm:$0xff]  ;;  %v469_v5 = vld [vmem:[#allocation7 + $0x48] sm:$0xff]  ;;  %vm2152_vm11 = vmmov 0   ;;  %s1744_s15 = sshll.u32 %s2153_s14, 4  ;;  %s1745_s15 = int_to_ptr.vmem [resolvable:$true] %s1744_s15 }
  0x34   :  { %v79_v17 = vmul.f32 %v78_v15, %v75_v7  ;;  %v80_v18 = vmul.f32 %v78_v15, %v76_v8  ;;  %v87_v19 = vstv %s1758_s10  ;;  %v467_v7 = vld [vmem:[#allocation7 + $0x38] sm:$0xff]  ;;  %v2151_v8 = vmov 0.0   ;;  %v560_v15 = vld [vmem:[#allocation7 + $0x68] sm:$0xff]  ;;  %s2118_s16 = scalar_lea.vmem %s1745_s15, 64  ;;  %p2123_p2 = scmp.lt.s32.totalorder %s1745_s15, %s1745_s15 }
  0x35   :  { %v72_v21 = vadd.f32 %v70_v13, %v63_v9  ;;  %v88_v22 = vmul.f32 %v87_v19, %v84_v12  ;;  %v96_v24 = vstv %s1759_s11  ;;  %v89_v25 = vmul.f32 %v87_v19, %v85_v16  ;;  %v562_v13 = vld [vmem:[#allocation7 + $0x78] sm:$0xff]  ;;  %v559_v16 = vld [vmem:[#allocation7 + $0x60] sm:$0xff]  ;;  %p2119_p1 = scmp.ne.s32.totalorder %s1745_s15, %s2118_s16  ;;  %p2124_p3 = scmp.lt.s32.totalorder %s2118_s16, %s2118_s16 }
  0x36   :  { %v105_v27 = vstv %s2200_s12  ;;  %v73_v28 = vadd.f32 %v71_v14, %v64_v10  ;;  %v97_v30 = vmul.f32 %v96_v24, %v93_v20  ;;  %v98_v32 = vmul.f32 %v96_v24, %v94_v23  ;;  %v561_v14 = vld [vmem:[#allocation7 + $0x70] sm:$0xff]  ;;  %v1777_v24 = vld [vmem:[#allocation7 + $0x80] ss:$0 sm:$0xff] }
  0x37   :  { %v81_v29 = vadd.f32 %v79_v17, %v72_v21  ;;  %v106_v35 = vmul.f32 %v105_v27, %v102_v26  ;;  %v107_v36 = vmul.f32 %v105_v27, %v103_v31  ;;  %v113_v43 = vstv %s112_s2  ;;  %v1774_v17 = vld [vmem:[#allocation7 + $0x58] ss:$0 sm:$0xff]  ;;  %v650_v26 = vld [vmem:[#allocation7 + $0xa0] sm:$0x3f]  ;;  %p2125_p4 = por %p2124_p3, %p2123_p2 }
  0x38   :  { %v82_v33 = vadd.f32 %v80_v18, %v73_v28  ;;  %v114_v44 = vmul.f32 %v113_v43, %v110_v1  ;;  %v115_v45 = vmul.f32 %v113_v43, %v2191_v0  ;;  %vm1663_vm14 = vcmask 523264  }
  0x39   :  { %v90_v34 = vadd.f32 %v88_v22, %v81_v29  ;;  %v649_v29 = vld [vmem:[#allocation7 + $0x98] sm:$0xff]  ;;  %p2126_p5 = pnand %p2125_p4, %p2119_p1 }
  0x3a   :  { %v91_v37 = vadd.f32 %v89_v25, %v82_v33 }
  0x3b   :  { %v99_v38 = vadd.f32 %v97_v30, %v90_v34 }
  0x3c   :  { %v100_v39 = vadd.f32 %v98_v32, %v91_v37 }
  0x3d   :  { %v2203_v40 = vadd.f32 %v106_v35, %v99_v38 }
  0x3e   :  { %v2205_v41 = vadd.f32 %v107_v36, %v100_v39 }
  0x3f   :  { %1888 = vmatprep.mubr.msk.f32.mxu0 %vm116_vm1, %v2203_v40 }
  0x40   :  { %1889 = vmatmul.mubr.msk.f32.vlgmr.msra.gmra.mxu0 %vm116_vm1, %v2205_v41 }
  0x41   :  { %1911 = vmatprep.mubr.msk.f32.mxu0 %vm116_vm1, %v2203_v40 }
 0x100   :  { %v1890_v46 = vpop.f32.mrf.mxu0 }
 0x101   :  { %v199_v49 = vadd.f32 %v1890_v46, %v115_v45 }
 0x102   :  { %v193_v47 = vpop.f32.mrf.mxu0 }
 0x103   :  { %v194_v48 = vadd.f32 %v193_v47, %v114_v44 }
 0x105   :  { %1893 = vmatprep.mubr.msk.f32.mxu1 %vm208_vm3, %v194_v48 }
 0x106   :  { %1894 = vmatmul.mubr.msk.f32.vlgmr.msra.gmra.mxu1 %vm208_vm3, %v199_v49 }
 0x107   :  { %1897 = vmatpush3.msra.mxu1 %v299_v50 }
 0x108   :  { %1898 = vmatprep.subr.mxu1 %v298_v51 }
 0x109   :  { %1899 = vmatpush3.msra.mxu1 %v298_v51 }
 0x10a   :  { %1900 = vmatprep.subr.mxu1 %v297_v52 }
 0x10b   :  { %1901 = vmatpush3.msra.mxu1 %v297_v52 }
 0x10c   :  { %1902 = vmatprep.subr.mxu1 %v296_v53 }
 0x10d   :  { %1903 = vmatpush3.msra.mxu1 %v296_v53 }
 0x10e   :  { %1925 = vmatprep.subr.mxu1 %v562_v13 }
 0x1c6   :  { %v1895_v55 = vpop.f32.mrf.mxu1 }
 0x1c7   :  { %v291_v56 = vadd.f32 %v1895_v55, %v1764_v54 }
 0x1c8   :  { %v285_v57 = vpop.f32.mrf.mxu1 }
 0x1c9   :  { %v286_v58 = vadd.f32 %v1764_v54, %v285_v57  ;;  %v295_v60 = vmax.f32 %v291_v56, 0.0 }
 0x1cb   :  { %v294_v59 = vmax.f32 %v286_v58, 0.0 }
 0x1cd   :  { %1904 = vmatprep.mubr.msk.f32.mxu1 %vm305_vm4, %v294_v59 }
 0x1ce   :  { %1905 = vmatmul.mubr.msk.f32.vlgmr.msra.gmra.mxu1 %vm305_vm4, %v295_v60 }
 0x1cf   :  { %1926 = vmatpush3.msra.mxu1 %v562_v13 }
 0x1d0   :  { %1927 = vmatprep.subr.mxu1 %v561_v14 }
 0x1d1   :  { %1928 = vmatpush3.msra.mxu1 %v561_v14 }
 0x1d2   :  { %1929 = vmatprep.subr.mxu1 %v560_v15 }
 0x1d3   :  { %1930 = vmatpush3.msra.mxu1 %v560_v15 }
 0x1d4   :  { %1931 = vmatprep.subr.mxu1 %v559_v16 }
 0x1d5   :  { %1932 = vmatpush3.msra.mxu1 %v559_v16 }
 0x1d6   :  { %1957 = vmatprep.subr.mxu1 %v2151_v8 }
 0x28e   :  { %v1906_v62 = vpop.f32.mrf.mxu1 }
 0x28f   :  { %v384_v63 = vadd.f32 %v1906_v62, %v1768_v61 }
 0x290   :  { %v378_v0 = vpop.f32.mrf.mxu1 }
 0x291   :  { %v388_v1 = vmax.f32 %v384_v63, 0.0  ;;  %v379_v2 = vadd.f32 %v1768_v61, %v378_v0  ;;  %v1787_v63 = vld [vmem:[#allocation7 + $0x90] ss:$0 sm:$0xff] }
 0x293   :  { %v387_v3 = vmax.f32 %v379_v2, 0.0  ;;  %1907 = vmatprep.subr.msk.mxu0 %vm123_vm0, %v388_v1 }
 0x294   :  { %1908 = vmatpush3.msk.msra.mxu0 %vm123_vm0, %v388_v1 }
 0x295   :  { %1909 = vmatprep.subr.mxu0 %v387_v3 }
 0x296   :  { %1910 = vmatpush3.msra.mxu0 %v387_v3 }
 0x297   :  { %1912 = vmatmul.mubr.msk.f32.vlgmr.msra.gmra.mxu0 %vm116_vm1, %v2205_v41  ;;  %1914 = vmatprep.subr.mxu0 %v470_v4 }
 0x298   :  { %1915 = vmatpush3.msra.mxu0 %v470_v4  ;;  %v1033_v4 = vld [vmem:[#allocation7 + $0xc0] sm:$0xff] }
 0x299   :  { %1916 = vmatprep.subr.mxu0 %v469_v5 }
 0x29a   :  { %1917 = vmatpush3.msra.mxu0 %v469_v5  ;;  %v1032_v5 = vld [vmem:[#allocation7 + $0xb8] sm:$0xff] }
 0x29b   :  { %1918 = vmatprep.subr.mxu0 %v468_v6 }
 0x29c   :  { %1919 = vmatpush3.msra.mxu0 %v468_v6 }
 0x29d   :  { %1920 = vmatprep.subr.mxu0 %v467_v7 }
 0x29e   :  { %1921 = vmatpush3.msra.mxu0 %v467_v7 }
 0x29f   :  { %1936 = vmatprep.subr.mxu0 %v2151_v8 }
 0x357   :  { %v1913_v9 = vpop.f32.mrf.mxu0 }
 0x358   :  { %v464_v12 = vadd.f32 %v1913_v9, %v388_v1  ;;  %v1031_v9 = vld [vmem:[#allocation7 + $0xb0] sm:$0xff] }
 0x359   :  { %v458_v10 = vpop.f32.mrf.mxu0 }
 0x35a   :  { %v459_v11 = vadd.f32 %v458_v10, %v387_v3  ;;  %v1030_v10 = vld [vmem:[#allocation7 + $0xa8] sm:$0xff] }
 0x35c   :  { %1922 = vmatprep.mubr.msk.f32.mxu0 %vm305_vm4, %v459_v11  ;;  %v1116_v11 = vld [vmem:[#allocation7 + $0xe8] sm:$0xff] }
 0x35d   :  { %1923 = vmatmul.mubr.msk.f32.vlgmr.msra.gmra.mxu0 %vm305_vm4, %v464_v12  ;;  %v955_v12 = vstv %s1788_s13 }
 0x35e   :  { %1937 = vmatpush3.msk.msra.mxu0 %vm123_vm0, %v388_v1  ;;  %1940 = vmatprep.mubr.msk.f32.mxu0 %vm2152_vm11, %v2151_v8 }
 0x35f   :  { %1938 = vmatprep.subr.mxu0 %v2151_v8 }
 0x360   :  { %1939 = vmatpush3.msra.mxu0 %v387_v3 }
 0x361   :  { %1943 = vmatprep.subr.mxu0 %v2151_v8 }
 0x41d   :  { %v1924_v18 = vpop.f32.mrf.mxu0 }
 0x41e   :  { %v554_v19 = vadd.f32 %v1924_v18, %v1774_v17  ;;  %v1114_v18 = vld [vmem:[#allocation7 + $0xd8] sm:$0xff] }
 0x41f   :  { %v548_v20 = vpop.f32.mrf.mxu0 }
 0x420   :  { %v549_v21 = vadd.f32 %v1774_v17, %v548_v20  ;;  %v558_v23 = vmax.f32 %v554_v19, 0.0  ;;  %v1115_v17 = vld [vmem:[#allocation7 + $0xe0] sm:$0xff]  ;;  %v1113_v19 = vld [vmem:[#allocation7 + $0xd0] sm:$0xff]  ;;  %v1790_v20 = vld [vmem:[#allocation7 + $0xc8] ss:$0 sm:$0xff] }
 0x422   :  { %v557_v22 = vmax.f32 %v549_v21, 0.0 }
 0x424   :  { %1933 = vmatprep.mubr.msk.f32.mxu1 %vm305_vm4, %v557_v22 }
 0x425   :  { %1934 = vmatmul.mubr.msk.f32.vlgmr.msra.gmra.mxu1 %vm305_vm4, %v558_v23 }
 0x426   :  { %1959 = vmatprep.mubr.msk.f32.mxu1 %vm2152_vm11, %v2151_v8 }
 0x4e5   :  { %v1935_v25 = vpop.f32.mrf.mxu1 }
 0x4e6   :  { %v646_v27 = vadd.f32 %v1935_v25, %v1777_v24  ;;  %v1269_v25 = vld [vmem:[#allocation7 + $0x110] sm:$0xff] }
 0x4e7   :  { %v640_v28 = vpop.f32.mrf.mxu1 }
 0x4e8   :  { %v652_v30 = vmul.f32 %v650_v26, %v646_v27  ;;  %v641_v31 = vadd.f32 %v1777_v24, %v640_v28  ;;  %v1267_v27 = vld [vmem:[#allocation7 + $0x100] sm:$0xff]  ;;  %v1792_v28 = vld [vmem:[#allocation7 + $0xf0] ss:$0 sm:$0xff] }
 0x4ea   :  { %v651_v32 = vmul.f32 %v649_v29, %v641_v31  ;;  %vm654_vm7 = vcmp.ne.f32.partialorder %v652_v30, 0.0 }
 0x4eb   :  { %v656_v35 = vsel %vm654_vm7, %v652_v30, -inf }
 0x4ec   :  { %vm653_vm6 = vcmp.ne.f32.partialorder %v651_v32, 0.0  ;;  %v662_v36 = vsel %vm661_vm8, %v656_v35, -inf }
 0x4ed   :  { %v655_v33 = vsel %vm653_vm6, %v651_v32, -inf }
 0x4ee   :  { %v658_v34 = vsel %vm657_vm5, %v655_v33, -inf }
 0x4ef   :  { %659 = vmax.xlane.f32.xlu0 %v658_v34  ;;  %v1352_v34 = vld [vmem:[#allocation7 + $0x138] sm:$0xff] }
 0x4f3   :  { %663 = vmax.xlane.f32.xlu0 %v662_v36 }
 0x578   :  { %v660_v37 = vpop.xlane.xlu0 %659 }
 0x579   :  { %vm665_vm9 = vcmp.gt.f32.partialorder %v660_v37, -inf }
 0x57a   :  { %v667_v38 = vsel %vm665_vm9, %v660_v37, 0.0 }
 0x57b   :  { %v669_v39 = vsub.f32 %v655_v33, %v667_v38  ;;  %v1266_v33 = vld [vmem:[#allocation7 + $0xf8] sm:$0xff]  ;;  %v1351_v38 = vld [vmem:[#allocation7 + $0x130] sm:$0xff] }
 0x57c   :  { %v664_v42 = vpop.xlane.xlu0 %663 }
 0x57d   :  { %v671_v43 = vmul.f32 1.442695, %v669_v39  ;;  %vm666_vm10 = vcmp.gt.f32.partialorder %v664_v42, -inf  ;;  %v1350_v39 = vld [vmem:[#allocation7 + $0x128] sm:$0xff] }
 0x57e   :  { %v668_v44 = vsel %vm666_vm10, %v664_v42, 0.0  ;;  %v1349_v42 = vld [vmem:[#allocation7 + $0x120] sm:$0xff] }
 0x57f   :  { %2054 = vpow2.f32 %v671_v43  ;;  %v670_v45 = vsub.f32 %v656_v35, %v668_v44  ;;  %v1795_v43 = vld [vmem:[#allocation7 + $0x118] ss:$0 sm:$0xff] }
 0x581   :  { %v673_v46 = vmul.f32 1.442695, %v670_v45 }
 0x583   :  { %2056 = vpow2.f32 %v673_v46 }
 0x58c   :  { %v2055_v47 = vpop.eup %2054 }
 0x58d   :  { %v675_v48 = vsel %vm657_vm5, %v2055_v47, 0.0 }
 0x58e   :  { %676 = vadd.xlane.f32.xlu1 %v675_v48  ;;  %v1797_v48 = vld [vmem:[#allocation7 + $0x140] ss:$0 sm:$0xff] }
 0x590   :  { %v2057_v49 = vpop.eup %2056 }
 0x591   :  { %v678_v50 = vsel %vm661_vm8, %v2057_v49, 0.0 }
 0x592   :  { %679 = vadd.xlane.f32.xlu1 %v678_v50  ;;  %v1431_v50 = vld [vmem:[#allocation7 + $0x158] sm:$0xff] }
 0x617   :  { %v677_v51 = vpop.xlane.xlu1 %676 }
 0x618   :  { %v681_v52 = vmax.f32 %v677_v51, 1e-30 }
 0x61a   :  { %2058 = vrcp.f32 %v681_v52 }
 0x61b   :  { %v680_v53 = vpop.xlane.xlu1 %679 }
 0x61c   :  { %v682_v54 = vmax.f32 %v680_v53, 1e-30 }
 0x61e   :  { %2060 = vrcp.f32 %v682_v54 }
 0x627   :  { %v2059_v55 = vpop.eup %2058 }
 0x628   :  { %v684_v56 = vmul.f32 %v2059_v55, %v2055_v47 }
 0x62a   :  { %v687_v57 = vmul.f32 %v684_v56, %v649_v29 }
 0x62b   :  { %v2061_v58 = vpop.eup %2060 }
 0x62c   :  { %689 = vxpose.xlu0.b32.start [1/2] (short) (narrow) %v687_v57, 8  ;;  %v686_v59 = vmul.f32 %v2061_v58, %v2057_v49 }
 0x62e   :  { %v688_v60 = vmul.f32 %v686_v59, %v650_v26  ;;  %v1268_v26 = vld [vmem:[#allocation7 + $0x108] sm:$0xff] }
 0x630   :  { %690 = vxpose.xlu0.b32.end [2/2] (short) (narrow) %v688_v60, 8 }
 0x6a8   :  { %v705_v61 = vpop.trf.xlu0 }
 0x6a9   :  { %1941 = vmatmul.mubr.msk.f32.vlgmr.msra.gmra.mxu0 %vm116_vm1, %v705_v61 }
 0x6aa   :  { %1944 = vmatpush3.msk.msra.mxu0 %vm123_vm0, %v2205_v41  ;;  %1947 = vmatprep.mubr.msk.f32.mxu0 %vm2152_vm11, %v2151_v8  ;;  %v1786_v41 = vld [vmem:[#allocation7 + $0x88] ss:$0 sm:$0xff] }
 0x6ab   :  { %1945 = vmatprep.subr.mxu0 %v2151_v8 }
 0x6ac   :  { %1946 = vmatpush3.msra.mxu0 %v2203_v40 }
 0x6ad   :  { %1950 = vmatprep.subr.mxu0 %v2151_v8  ;;  %1948 = vmatmul.mubr.msk.f32.vlgmr.msra.gmra.mxu0 %vm116_vm1, %v705_v61 }
 0x6ae   :  { %1951 = vmatpush3.msk.msra.mxu0 %vm123_vm0, %v688_v60  ;;  %1954 = vmatprep.mubr.msk.f32.mxu0 %vm2152_vm11, %v2151_v8 }
 0x6af   :  { %1952 = vmatprep.subr.mxu0 %v2151_v8 }
 0x6b0   :  { %1953 = vmatpush3.msra.mxu0 %v687_v57 }
 0x6b1   :  { %1962 = vmatprep.subr.mxu0 %v2151_v8 }
 0x769   :  { %v790_v62 = vpop.f32.mrf.mxu0 }
 0x76a   :  { %v948_v0 = vmul.f32 %v1786_v41, %v790_v62 }
 0x76b   :  { %v1942_v1 = vpop.f32.mrf.mxu0 }
 0x76c   :  { %v953_v40 = vadd.f32 %v1787_v63, %v948_v0  ;;  %v1570_v1 = vld [vmem:[#allocation7 + $0x178] sm:$0xff] }
 0x76d   :  { %v862_v2 = vpop.f32.mrf.mxu0 }
 0x76e   :  { %1955 = vmatmul.mubr.msk.f32.vlgmr.msra.gmra.mxu0 %vm116_vm1, %v862_v2  ;;  %1958 = vmatpush3.msra.mxu1 %v953_v40  ;;  %v956_v13 = vmul.f32 %v955_v12, %v953_v40  ;;  %v1800_v12 = vld [vmem:[#allocation7 + $0x148] ss:$0 sm:$0xff] }
 0x76f   :  { %v1949_v3 = vpop.f32.mrf.mxu0  ;;  %1970 = vmatprep.mubr.msk.f32.mxu0 %vm2152_vm11, %v2151_v8  ;;  %1973 = vmatprep.subr.mxu1 %v2151_v8 }
 0x770   :  { %1963 = vmatpush3.msra.mxu0 %v1033_v4  ;;  %v1569_v3 = vld [vmem:[#allocation7 + $0x170] sm:$0xff]  ;;  %v1568_v4 = vld [vmem:[#allocation7 + $0x168] sm:$0xff] }
 0x771   :  { %1964 = vmatprep.subr.mxu0 %v2151_v8 }
 0x772   :  { %1965 = vmatpush3.msra.mxu0 %v1032_v5  ;;  %v1567_v5 = vld [vmem:[#allocation7 + $0x160] sm:$0xff] }
 0x773   :  { %1966 = vmatprep.subr.mxu0 %v2151_v8 }
 0x774   :  { %1967 = vmatpush3.msra.mxu0 %v1031_v9  ;;  %v1655_v9 = vld [vmem:[#allocation7 + $0x1b0] sm:$0xff] }
 0x775   :  { %1968 = vmatprep.subr.mxu0 %v2151_v8 }
 0x776   :  { %1969 = vmatpush3.msra.mxu0 %v1030_v10  ;;  %v1654_v10 = vld [vmem:[#allocation7 + $0x1a8] sm:$0xff] }
 0x777   :  { %1984 = vmatprep.subr.mxu0 %v2151_v8 }
 0x82e   :  { %v938_v6 = vpop.f32.mrf.mxu0 }
 0x82f   :  { %1960 = vmatmul.mubr.msk.f32.vlgmr.msra.gmra.mxu1 %vm657_vm5, %v938_v6 }
 0x830   :  { %v1956_v7 = vpop.f32.mrf.mxu0  ;;  %1981 = vmatprep.mubr.msk.f32.mxu1 %vm2152_vm11, %v2151_v8  ;;  %1974 = vmatpush3.msra.mxu1 %v1116_v11  ;;  %v1653_v11 = vld [vmem:[#allocation7 + $0x1a0] sm:$0xff] }
 0x831   :  { %1975 = vmatprep.subr.mxu1 %v2151_v8  ;;  %v1656_v7 = vld [vmem:[#allocation7 + $0x1b8] sm:$0xff] }
 0x832   :  { %1976 = vmatpush3.msra.mxu1 %v1115_v17 }
 0x833   :  { %1977 = vmatprep.subr.mxu1 %v2151_v8 }
 0x834   :  { %1978 = vmatpush3.msra.mxu1 %v1114_v18  ;;  %v1652_v18 = vld [vmem:[#allocation7 + $0x198] sm:$0xff] }
 0x835   :  { %1979 = vmatprep.subr.mxu1 %v2151_v8 }
 0x836   :  { %1980 = vmatpush3.msra.mxu1 %v1113_v19  ;;  %v1651_v19 = vld [vmem:[#allocation7 + $0x190] sm:$0xff] }
 0x837   :  { %1989 = vmatprep.subr.mxu1 %v2151_v8 }
 0x8ef   :  { %v1026_v14 = vpop.f32.mrf.mxu1 }
 0x8f0   :  { %v1027_v15 = vadd.f32 %v1026_v14, %v956_v13  ;;  %v1801_v14 = vld [vmem:[#allocation7 + $0x150] ss:$0 sm:$0xff] }
 0x8f1   :  { %v1961_v16 = vpop.f32.mrf.mxu1 }
 0x8f2   :  { %1971 = vmatmul.mubr.msk.f32.vlgmr.msra.gmra.mxu0 %vm305_vm4, %v1027_v15 }
 0x8f3   :  { %1986 = vmatprep.mubr.msk.f32.mxu0 %vm2152_vm11, %v2151_v8 }
 0x9b2   :  { %v1108_v21 = vpop.f32.mrf.mxu0 }
 0x9b3   :  { %v1109_v22 = vadd.f32 %v1790_v20, %v1108_v21  ;;  %v1650_v20 = vld [vmem:[#allocation7 + $0x188] sm:$0xff]  ;;  %v1802_v21 = vld [vmem:[#allocation7 + $0x180] ss:$0 sm:$0xff] }
 0x9b4   :  { %v1972_v23 = vpop.f32.mrf.mxu0 }
 0x9b5   :  { %v1112_v24 = vmax.f32 %v1109_v22, 0.0 }
 0x9b7   :  { %1982 = vmatmul.mubr.msk.f32.vlgmr.msra.gmra.mxu1 %vm305_vm4, %v1112_v24 }
 0x9b8   :  { %1997 = vmatprep.mubr.msk.f32.mxu1 %vm2152_vm11, %v2151_v8  ;;  %1990 = vmatpush3.msra.mxu1 %v1269_v25 }
 0x9b9   :  { %1991 = vmatprep.subr.mxu1 %v2151_v8 }
 0x9ba   :  { %1992 = vmatpush3.msra.mxu1 %v1268_v26  ;;  %v1804_v26 = vld [vmem:[#allocation7 + $0x1c8] ss:$0 sm:$0xff] }
 0x9bb   :  { %1993 = vmatprep.subr.mxu1 %v2151_v8 }
 0x9bc   :  { %1994 = vmatpush3.msra.mxu1 %v1267_v27 }
 0x9bd   :  { %1995 = vmatprep.subr.mxu1 %v2151_v8 }
 0x9be   :  { %1996 = vmatpush3.msra.mxu1 %v1266_v33 }
 0x9bf   :  { %2011 = vmatprep.subr.mxu1 %v2151_v8 }
 0xa77   :  { %v1191_v29 = vpop.f32.mrf.mxu1 }
 0xa78   :  { %v1192_v30 = vadd.f32 %v1792_v28, %v1191_v29 }
 0xa79   :  { %v1983_v31 = vpop.f32.mrf.mxu1 }
 0xa7a   :  { %v1195_v32 = vmax.f32 %v1192_v30, 0.0 }
 0xa7c   :  { %1985 = vmatpush3.msra.mxu0 %v1195_v32 }
 0xa7d   :  { %1987 = vmatmul.mubr.msk.f32.vlgmr.msra.gmra.mxu0 %vm657_vm5, %v938_v6  ;;  %2000 = vmatprep.subr.mxu0 %v2151_v8  ;;  %v1657_v6 = vld [vmem:[#allocation7 + $0x1c0] sm:$0xff] }
 0xa7e   :  { %2008 = vmatprep.mubr.msk.f32.mxu0 %vm2152_vm11, %v2151_v8  ;;  %2001 = vmatpush3.msra.mxu0 %v1352_v34 }
 0xa7f   :  { %2002 = vmatprep.subr.mxu0 %v2151_v8 }
 0xa80   :  { %2003 = vmatpush3.msra.mxu0 %v1351_v38 }
 0xa81   :  { %2004 = vmatprep.subr.mxu0 %v2151_v8 }
 0xa82   :  { %2005 = vmatpush3.msra.mxu0 %v1350_v39 }
 0xa83   :  { %2006 = vmatprep.subr.mxu0 %v2151_v8 }
 0xa84   :  { %2007 = vmatpush3.msra.mxu0 %v1349_v42 }
 0xa85   :  { %2016 = vmatprep.subr.mxu0 %v2151_v8 }
 0xb3d   :  { %v1262_v35 = vpop.f32.mrf.mxu0 }
 0xb3e   :  { %v1263_v36 = vadd.f32 %v1262_v35, %v1195_v32 }
 0xb3f   :  { %v1988_v37 = vpop.f32.mrf.mxu0 }
 0xb40   :  { %1998 = vmatmul.mubr.msk.f32.vlgmr.msra.gmra.mxu1 %vm305_vm4, %v1263_v36 }
 0xb41   :  { %2012 = vmatpush3.msra.mxu1 %v1195_v32  ;;  %2013 = vmatprep.mubr.msk.f32.mxu1 %vm2152_vm11, %v2151_v8 }
 0xb42   :  { %2027 = vmatprep.subr.mxu1 %v2151_v8 }
 0xc00   :  { %v1344_v44 = vpop.f32.mrf.mxu1 }
 0xc01   :  { %v1345_v45 = vadd.f32 %v1795_v43, %v1344_v44 }
 0xc02   :  { %v1999_v46 = vpop.f32.mrf.mxu1 }
 0xc03   :  { %v1348_v47 = vmax.f32 %v1345_v45, 0.0 }
 0xc05   :  { %2009 = vmatmul.mubr.msk.f32.vlgmr.msra.gmra.mxu0 %vm305_vm4, %v1348_v47 }
 0xc06   :  { %2024 = vmatprep.mubr.msk.f32.mxu0 %vm2152_vm11, %v2151_v8  ;;  %2017 = vmatpush3.msra.mxu0 %v1570_v1 }
 0xc07   :  { %2018 = vmatprep.subr.mxu0 %v2151_v8 }
 0xc08   :  { %2019 = vmatpush3.msra.mxu0 %v1569_v3 }
 0xc09   :  { %2020 = vmatprep.subr.mxu0 %v2151_v8 }
 0xc0a   :  { %2021 = vmatpush3.msra.mxu0 %v1568_v4 }
 0xc0b   :  { %2022 = vmatprep.subr.mxu0 %v2151_v8 }
 0xc0c   :  { %2023 = vmatpush3.msra.mxu0 %v1567_v5 }
 0xcc5   :  { %v1427_v49 = vpop.f32.mrf.mxu0 }
 0xcc6   :  { %v1428_v51 = vadd.f32 %v1797_v48, %v1427_v49 }
 0xcc7   :  { %v2010_v52 = vpop.f32.mrf.mxu0 }
 0xcc8   :  { %v1432_v53 = vmul.f32 %v1431_v50, %v1428_v51 }
 0xcca   :  { %vm1433_vm12 = vcmp.ne.f32.partialorder %v1432_v53, 0.0 }
 0xccb   :  { %v1434_v54 = vsel %vm1433_vm12, %v1432_v53, -inf }
 0xccc   :  { %v1435_v55 = vsel %vm208_vm3, %v1434_v54, -inf }
 0xccd   :  { %1436 = vmax.xlane.f32.xlu1 %v1435_v55 }
 0xd56   :  { %v1437_v56 = vpop.xlane.xlu1 %1436 }
 0xd57   :  { %vm1438_vm13 = vcmp.gt.f32.partialorder %v1437_v56, -inf }
 0xd58   :  { %v1439_v57 = vsel %vm1438_vm13, %v1437_v56, 0.0 }
 0xd59   :  { %v1440_v58 = vsub.f32 %v1434_v54, %v1439_v57 }
 0xd5b   :  { %v1441_v59 = vmul.f32 1.442695, %v1440_v58 }
 0xd5d   :  { %2062 = vpow2.f32 %v1441_v59 }
 0xd6a   :  { %v2063_v60 = vpop.eup %2062 }
 0xd6b   :  { %v1443_v61 = vsel %vm208_vm3, %v2063_v60, 0.0 }
 0xd6c   :  { %1444 = vadd.xlane.f32.xlu1 %v1443_v61 }
 0xdf5   :  { %v1445_v41 = vpop.xlane.xlu1 %1444 }
 0xdf6   :  { %v1446_v62 = vmax.f32 %v1445_v41, 1e-30 }
 0xdf8   :  { %2064 = vrcp.f32 %v1446_v62 }
 0xe05   :  { %v2065_v63 = vpop.eup %2064 }
 0xe06   :  { %v1448_v0 = vmul.f32 %v2065_v63, %v2063_v60 }
 0xe08   :  { %v1449_v40 = vmul.f32 %v1448_v0, %v1431_v50 }
 0xe0a   :  { %1450 = vxpose.xlu1.b32.start.end [1/1] (short) (narrow) %v1449_v40, 8 }
 0xe86   :  { %v1466_v2 = vpop.trf.xlu1 }
 0xe87   :  { %2014 = vmatmul.mubr.msk.f32.vlgmr.msra.gmra.mxu1 %vm657_vm5, %v1466_v2 }
 0xe88   :  { %2043 = vmatprep.mubr.msk.f32.mxu1 %vm2152_vm11, %v2151_v8  ;;  %2028 = vmatpush3.msra.mxu1 %v1657_v6 }
 0xe89   :  { %2029 = vmatprep.subr.mxu1 %v2151_v8 }
 0xe8a   :  { %2030 = vmatpush3.msra.mxu1 %v1656_v7 }
 0xe8b   :  { %2031 = vmatprep.subr.mxu1 %v2151_v8 }
 0xe8c   :  { %2032 = vmatpush3.msra.mxu1 %v1655_v9 }
 0xe8d   :  { %2033 = vmatprep.subr.mxu1 %v2151_v8 }
 0xe8e   :  { %2034 = vmatpush3.msra.mxu1 %v1654_v10 }
 0xe8f   :  { %2035 = vmatprep.subr.mxu1 %v2151_v8 }
 0xe90   :  { %2036 = vmatpush3.msra.mxu1 %v1653_v11 }
 0xe91   :  { %2037 = vmatprep.subr.mxu1 %v2151_v8 }
 0xe92   :  { %2038 = vmatpush3.msra.mxu1 %v1652_v18 }
 0xe93   :  { %2039 = vmatprep.subr.mxu1 %v2151_v8 }
 0xe94   :  { %2040 = vmatpush3.msra.mxu1 %v1651_v19 }
 0xe95   :  { %2041 = vmatprep.subr.mxu1 %v2151_v8 }
 0xe96   :  { %2042 = vmatpush3.msra.mxu1 %v1650_v20 }
 0xf47   :  { %v1551_v13 = vpop.f32.mrf.mxu1 }
 0xf48   :  { %v1561_v15 = vmul.f32 %v1800_v12, %v1551_v13 }
 0xf49   :  { %v2015_v16 = vpop.f32.mrf.mxu1 }
 0xf4a   :  { %v1566_v17 = vadd.f32 %v1801_v14, %v1561_v15 }
 0xf4c   :  { %2025 = vmatmul.mubr.msk.f32.vlgmr.msra.gmra.mxu0 %vm305_vm4, %v1566_v17 }
0x100c   :  { %v1645_v22 = vpop.f32.mrf.mxu0 }
0x100d   :  { %v1646_v23 = vadd.f32 %v1802_v21, %v1645_v22 }
0x100e   :  { %v2026_v24 = vpop.f32.mrf.mxu0 }
0x100f   :  { %v1649_v25 = vmax.f32 %v1646_v23, 0.0 }
0x1011   :  { %2044 = vmatmul.mubr.msk.f32.vlgmr.msra.gmra.mxu1 %vm1663_vm14, %v1649_v25 }
0x10d1   :  { %v1733_v27 = vpop.f32.mrf.mxu1 }
0x10d2   :  { %v1734_v28 = vadd.f32 %v1804_v26, %v1733_v27 }
0x10d3   :  { %v2045_v29 = vpop.f32.mrf.mxu1 }
0x10d4   :  { %1737 = vst [vmem:[#allocation9] sm:$0xf] %v1734_v28 }
0x10d5   :  { %2129 = shalt.err (!%p2126_p5)
}
0x10d6   :  { %1747 = dma.vmem_to_hbm [thread:$0]  %s1745_s15, 64, %s2316_s4, [#allocation4]  }
0x10d7   :  { %2144 = dma.done.wait [#allocation4], 64  }
0x10d8   :  { %2145 = vsyncadd [#allocation4], 4294967232 }
0x10d9   :  { %1751 = vsyncpa [#allocation3], 1 }
0x10da   :  { %1752 = vsyncpa [#allocation8], 1 }
0x10db   :  { %1753 = vsyncpa [#allocation4], 1 }
0x10dc   :  { %1754 = vsyncpa [#allocation5], 1 }

</bundles_post_ra>
